<compile_context>
chip_gen: v7x
topology: tpu7x:2x2x1
jax: 0.10.0
libtpu: 0.0.40
codegen_flags: <defaults>
</compile_context>

<pallas_src>
import functools

import jax
import jax.numpy as jnp
from jax.experimental import pallas as pl
from jax.experimental.pallas import tpu as pltpu

ALPHA = 0.7
BETA = 0.2
GAMMA = 0.1  # unused in the forward pass (kept for parity with the module)


def _vmem_capacity_bytes():
    try:
        return int(pltpu.get_tpu_info().vmem_capacity_bytes)
    except Exception:
        return 64 << 20  # conservative fallback: v7x per-TC VMEM


# --------------------------------------------------------------------------- #
# Kernel A: numerically stable BCE-with-logits, summed over the (B, C) block.
# --------------------------------------------------------------------------- #
def _bce_sum_kernel(pred_ref, tgt_ref, out_ref):
    x = pred_ref[...].astype(jnp.float32)
    t = tgt_ref[...].astype(jnp.float32)
    bce = jnp.maximum(x, 0.0) - x * t + jnp.log1p(jnp.exp(-jnp.abs(x)))
    out_ref[0, 0] = jnp.sum(bce)


def _bce_sum(predictions, targets):
    b, c = predictions.shape
    n = b * c
    itemsize = predictions.dtype.itemsize
    cost = pl.CostEstimate(
        flops=6 * n, transcendentals=2 * n, bytes_accessed=2 * n * itemsize + 4)
    out = pl.pallas_call(
        _bce_sum_kernel,
        out_shape=jax.ShapeDtypeStruct((1, 1), jnp.float32),
        in_specs=[pl.BlockSpec(memory_space=pltpu.VMEM),
                  pl.BlockSpec(memory_space=pltpu.VMEM)],
        out_specs=pl.BlockSpec(memory_space=pltpu.SMEM),
        cost_estimate=cost,
    )(predictions, targets)
    return out[0, 0]


# --------------------------------------------------------------------------- #
# Kernel B: streamed attention-diversity partials.
# Each grid step reads (tb, S, D) in natural layout, computes per-(b, d) std
# over axis=1 (two-pass, ddof=1, like torch.std) and writes a lane-dense
# (1, 1, D) partial sum over its batch tile. Grid axis is "parallel" (no
# carried state), so v7x megacore can shard it; JAX finishes the mean.
# --------------------------------------------------------------------------- #
def _attn_std_partial_kernel(attn_ref, out_ref, *, s_len):
    a = attn_ref[...].astype(jnp.float32)                       # (tb, S, D)
    mean = jnp.sum(a, axis=1, keepdims=True) * (1.0 / s_len)    # (tb, 1, D)
    diff = a - mean
    var = jnp.sum(diff * diff, axis=1) * (1.0 / (s_len - 1.0))  # (tb, D)
    std = jnp.sqrt(jnp.maximum(var, 0.0))
    out_ref[...] = jnp.sum(std, axis=0, keepdims=True)[None]    # (1, 1, D)


def _attn_std_sum(attention_weights, max_block_bytes=None):
    b, s, d = attention_weights.shape
    # torch.std(dim=1) uses correction=1: S=1 would divide by zero (NaN).
    assert s >= 2, "attention_weights needs at least 2 elements along dim=1"
    itemsize = attention_weights.dtype.itemsize
    vmem_cap = _vmem_capacity_bytes()
    if max_block_bytes is None:
        # Generation-aware per-buffer cap: ~16 MiB on 128-MiB parts, ~8 MiB on v7x.
        max_block_bytes = max(2 << 20, vmem_cap // 8)

    per_batch_bytes = s * d * itemsize
    max_tb = max(1, max_block_bytes // per_batch_bytes)
    tb = 1
    for cand in range(1, b + 1):  # largest divisor of B under the byte cap
        if b % cand == 0 and cand <= max_tb:
            tb = cand
    # TODO(synk): non-divisor-friendly batch counts (e.g. prime B) fall back to
    # smaller divisor tiles; pad B upstream (all-zero columns have std 0) if
    # that ever matters for throughput.
    nb = b // tb

    block_bytes = tb * s * d * itemsize
    needed = 2 * block_bytes + 2 * d * 4 + (1 << 20)  # dbl-buffered in + out + slack
    vmem_limit = int(min(0.75 * vmem_cap, max(4 << 20, needed)))

    cost = pl.CostEstimate(
        flops=5 * b * s * d,
        transcendentals=b * d,
        bytes_accessed=b * s * d * itemsize + nb * d * 4)

    partials = pl.pallas_call(
        functools.partial(_attn_std_partial_kernel, s_len=float(s)),
        out_shape=jax.ShapeDtypeStruct((nb, 1, d), jnp.float32),
        grid=(nb,),
        in_specs=[pl.BlockSpec((tb, s, d), lambda i: (i, 0, 0))],
        out_specs=pl.BlockSpec((1, 1, d), lambda i: (i, 0, 0)),
        compiler_params=pltpu.CompilerParams(
            dimension_semantics=("parallel",),
            vmem_limit_bytes=vmem_limit,
        ),
        cost_estimate=cost,
    )(attention_weights)
    # Tiny cross-block epilogue in plain JAX (keeps the grid axis parallel
    # instead of serializing it behind an SMEM accumulator).
    return jnp.sum(partials)


# --------------------------------------------------------------------------- #
# Wrapper with the HybridLoss.forward semantics.
# --------------------------------------------------------------------------- #
def hybrid_loss(predictions, targets, attention_weights=None, *,
                max_block_bytes=None):
    b, c = predictions.shape
    bce_loss = _bce_sum(predictions, targets) / float(b * c)
    pt = jnp.exp(-bce_loss)
    total = ALPHA * (1.0 - pt) ** 2 * bce_loss
    if attention_weights is not None:
        ba, _, d = attention_weights.shape
        std_sum = _attn_std_sum(attention_weights, max_block_bytes)
        attn_diversity_loss = -(std_sum / float(ba * d))
        total = total + BETA * attn_diversity_loss
    return total


def _hybrid_loss_ref(predictions, targets, attention_weights=None):
    x = predictions.astype(jnp.float32)
    t = targets.astype(jnp.float32)
    bce_elem = jnp.maximum(x, 0.0) - x * t + jnp.log1p(jnp.exp(-jnp.abs(x)))
    bce_loss = jnp.mean(bce_elem)
    pt = jnp.exp(-bce_loss)
    total = ALPHA * (1.0 - pt) ** 2 * bce_loss
    if attention_weights is not None:
        std = jnp.std(attention_weights.astype(jnp.float32), axis=1, ddof=1)
        total = total + BETA * (-jnp.mean(std))
    return total


if __name__ == "__main__":
    key = jax.random.PRNGKey(0)
    k1, k2, k3 = jax.random.split(key, 3)

    B, C = 8, 32
    S, D = 8, 64

    predictions = jax.random.normal(k1, (B, C), dtype=jnp.float32)
    targets = (jax.random.uniform(k2, (B, C)) > 0.5).astype(jnp.float32)
    attention_weights = jax.nn.softmax(
        jax.random.normal(k3, (B, S, D), dtype=jnp.float32), axis=1)

    ref = _hybrid_loss_ref(predictions, targets, attention_weights)

    # Auto-tiled path (single grid step at this tiny shape).
    loss = hybrid_loss(predictions, targets, attention_weights)
    jax.block_until_ready(loss)
    assert jnp.allclose(loss, ref, rtol=1e-5, atol=1e-6), (loss, ref)

    # Force a small per-block budget to exercise the multi-step "parallel"
    # streamed path (tb=2 -> 4 grid steps here).
    loss_tiled = hybrid_loss(predictions, targets, attention_weights,
                             max_block_bytes=S * D * 4 * 2)
    jax.block_until_ready(loss_tiled)
    assert jnp.allclose(loss_tiled, ref, rtol=1e-5, atol=1e-6), (loss_tiled, ref)

    # attention_weights=None branch.
    loss_na = hybrid_loss(predictions, targets, None)
    jax.block_until_ready(loss_na)
    ref_na = _hybrid_loss_ref(predictions, targets, None)
    assert jnp.allclose(loss_na, ref_na, rtol=1e-5, atol=1e-6), (loss_na, ref_na)

    print("KERNEL_OK")
</pallas_src>

<mosaic_0001>
module attributes {stable_mosaic.version = 11 : i64} {
  func.func @_bce_sum_kernel(%arg0: memref<8x32xf32, #tpu.memory_space<vmem>>, %arg1: memref<8x32xf32, #tpu.memory_space<vmem>>, %arg2: memref<1x1xf32, #tpu.memory_space<smem>>) attributes {dimension_semantics = [], scalar_prefetch = 0 : i64, scratch_operands = 0 : i64, tpu.core_type = #tpu.core_type<tc>} {
    %c0 = arith.constant 0 : index
    %c0_0 = arith.constant 0 : index
    %0 = vector.load %arg0[%c0, %c0_0] : memref<8x32xf32, #tpu.memory_space<vmem>>, vector<8x32xf32>
    %c0_1 = arith.constant 0 : index
    %c0_2 = arith.constant 0 : index
    %1 = vector.load %arg1[%c0_1, %c0_2] : memref<8x32xf32, #tpu.memory_space<vmem>>, vector<8x32xf32>
    %cst = arith.constant 0.000000e+00 : f32
    %2 = vector.broadcast %cst : f32 to vector<8x32xf32>
    %3 = arith.maximumf %0, %2 : vector<8x32xf32>
    %4 = arith.mulf %0, %1 : vector<8x32xf32>
    %5 = arith.subf %3, %4 : vector<8x32xf32>
    %6 = math.absf %0 : vector<8x32xf32>
    %cst_3 = arith.constant 0.000000e+00 : f32
    %7 = vector.broadcast %cst_3 : f32 to vector<8x32xf32>
    %8 = arith.subf %7, %6 : vector<8x32xf32>
    %9 = math.exp %8 : vector<8x32xf32>
    %10 = math.log1p %9 : vector<8x32xf32>
    %11 = arith.addf %5, %10 : vector<8x32xf32>
    %12 = vector.shape_cast %11 : vector<8x32xf32> to vector<1x8x32xf32>
    %cst_4 = arith.constant dense<0.000000e+00> : vector<1xf32>
    %13 = vector.multi_reduction <add>, %12, %cst_4 [1, 2] : vector<1x8x32xf32> to vector<1xf32>
    %14 = vector.shape_cast %13 : vector<1xf32> to vector<1x1x1xf32>
    %15 = vector.extract %14[0, 0, 0] : f32 from vector<1x1x1xf32>
    %c0_5 = arith.constant 0 : index
    %c0_6 = arith.constant 0 : index
    %16 = memref.load %arg2[%c0_5, %c0_6] : memref<1x1xf32, #tpu.memory_space<smem>>
    memref.store %15, %arg2[%c0_5, %c0_6] : memref<1x1xf32, #tpu.memory_space<smem>>
    return
  }
}

</mosaic_0001>

<bundles_post_ra>
// kernel: tpu_custom_call.1
= control target key start
LH: loop header
LB: loop body
LE: loop exit
PB: predicated region body
PF: predicated region fallthrough
CT: control target
= control target key end

     0   :  { %7 = vsyncpa [#allocation3], 0  ;;  %s206_s0 = inlined_call_operand.hbm [shape: f32[8,32], index: 0, kind: input, shape index: {}]   ;;  %s207_s1 = inlined_call_operand.hbm [shape: f32[8,32], index: 1, kind: input, shape index: {}]   ;;  %s208_s2 = inlined_call_operand.hbm [shape: f32[1,1], index: 2, kind: output, shape index: {}]  }
   0x1   :  { %8 = vsyncpa [#allocation6], 0 }
   0x2   :  { %9 = vsyncpa [#allocation4], 0  ;;  %s152_s9 = smov [#allocation2]   ;;  %s153_s11 = smov [#allocation5]  }
   0x3   :  { %s16_s10 = sshll.u32 %s152_s9, 4  ;;  %s26_s12 = sshll.u32 %s153_s11, 4  ;;  %s17_s10 = int_to_ptr.vmem [resolvable:$true] %s16_s10  ;;  %s27_s12 = int_to_ptr.vmem [resolvable:$true] %s26_s12 }
   0x4   :  { %s92_s15 = scalar_lea.hbm %s206_s0, 128 }
   0x5   :  { %p93_p0 = scmp.ne.s32.totalorder %s206_s0, %s92_s15  ;;  %p96_p1 = scmp.lt.u32.totalorder %s92_s15, %s206_s0 }
   0x7   :  { %p98_p2 = pnand %p96_p1, %p93_p0 }
   0x9   :  { %101 = shalt.err (!%p98_p2)
}
   0xa   :  { %s102_s20 = scalar_lea.vmem %s17_s10, 128  ;;  %p107_p4 = scmp.lt.s32.totalorder %s17_s10, %s17_s10 }
   0xb   :  { %p103_p3 = scmp.ne.s32.totalorder %s17_s10, %s102_s20  ;;  %p108_p5 = scmp.lt.s32.totalorder %s102_s20, %s102_s20 }
   0xd   :  { %p109_p6 = por %p108_p5, %p107_p4 }
   0xf   :  { %p110_p7 = pnand %p109_p6, %p103_p3 }
  0x11   :  { %113 = shalt.err (!%p110_p7)
}
  0x12   :  { %19 = dma.hbm_to_vmem [thread:$0]  %s206_s0, 128, %s17_s10, [#allocation3]  }
  0x13   :  { %s114_s25 = scalar_lea.hbm %s207_s1, 128 }
  0x14   :  { %p115_p8 = scmp.ne.s32.totalorder %s207_s1, %s114_s25  ;;  %p118_p9 = scmp.lt.u32.totalorder %s114_s25, %s207_s1 }
  0x16   :  { %p120_p10 = pnand %p118_p9, %p115_p8 }
  0x18   :  { %123 = shalt.err (!%p120_p10)
}
  0x19   :  { %s124_s30 = scalar_lea.vmem %s27_s12, 128  ;;  %p129_p12 = scmp.lt.s32.totalorder %s27_s12, %s27_s12 }
  0x1a   :  { %p125_p11 = scmp.ne.s32.totalorder %s27_s12, %s124_s30  ;;  %p130_p13 = scmp.lt.s32.totalorder %s124_s30, %s124_s30 }
  0x1c   :  { %p131_p0 = por %p130_p13, %p129_p12 }
  0x1e   :  { %p132_p1 = pnand %p131_p0, %p125_p11 }
  0x20   :  { %135 = shalt.err (!%p132_p1)
}
  0x21   :  { %29 = dma.hbm_to_vmem [thread:$0]  %s207_s1, 128, %s27_s12, [#allocation6]  }
  0x22   :  { %146 = dma.done.wait [#allocation3], 128  }
  0x23   :  { %147 = vsyncadd [#allocation3], 4294967168 }
  0x24   :  { %148 = dma.done.wait [#allocation6], 128  }
  0x25   :  { %149 = vsyncadd [#allocation6], 4294967168  ;;  %v36_v0 = vld [vmem:[#allocation2] sm:$0xff]  ;;  %v37_v7 = vld [vmem:[#allocation5] sm:$0xff]  ;;  %vm55_vm1 = vcmask 261120   ;;  %s136_s6 = scalar_lea.hbm %s208_s2, 16 }
  0x26   :  { %v41_v1 = vand.u32 2147483647, %v36_v0  ;;  %v38_v9 = vmax.f32 %v36_v0, 0.0  ;;  %v39_v10 = vmul.f32 %v37_v7, %v36_v0  ;;  %p137_p2 = scmp.ne.s32.totalorder %s208_s2, %s136_s6  ;;  %p140_p3 = scmp.lt.u32.totalorder %s136_s6, %s208_s2 }
  0x28   :  { %v42_v2 = vsub.f32 0.0, %v41_v1  ;;  %v40_v14 = vsub.f32 %v38_v9, %v39_v10  ;;  %p142_p4 = pnand %p140_p3, %p137_p2 }
  0x2a   :  { %v43_v3 = vmul.f32 1.442695, %v42_v2 }
  0x2c   :  { %88 = vpow2.f32 %v43_v3 }
  0x36   :  { %v89_v4 = vpop.eup %88 }
  0x37   :  { %v45_v5 = vadd.f32 1.0, %v89_v4  ;;  %v48_v6 = vmul.f32 -0.5, %v89_v4  ;;  %v51_v11 = vand.u32 2147483647, %v89_v4 }
  0x39   :  { %90 = vlog2.f32 %v45_v5  ;;  %v49_v8 = vadd.f32 1.0, %v48_v6  ;;  %vm52_vm0 = vcmp.lt.f32.partialorder %v51_v11, 0.0004427343 }
  0x3b   :  { %v50_v12 = vmul.f32 %v89_v4, %v49_v8 }
  0x43   :  { %v91_v13 = vpop.eup %90 }
  0x44   :  { %v47_v15 = vmul.f32 0.6931472, %v91_v13 }
  0x46   :  { %v53_v16 = vsel %vm52_vm0, %v50_v12, %v47_v15 }
  0x47   :  { %v54_v17 = vadd.f32 %v53_v16, %v40_v14 }
  0x49   :  { %v56_v18 = vsel %vm55_vm1, %v54_v17, 0.0 }
  0x4a   :  { %57 = vadd.xlane.f32.xlu0 %v56_v18 }
  0xd7   :  { %v58_v19 = vpop.xlane.xlu0 %57 }
  0xd8   :  { %v59_v20 = vrot.slane %v58_v19, 4 }
  0xda   :  { %v60_v21 = vadd.f32 %v59_v20, %v58_v19 }
  0xdc   :  { %v61_v22 = vrot.slane %v60_v21, 2 }
  0xde   :  { %v62_v23 = vadd.f32 %v61_v22, %v60_v21 }
  0xe0   :  { %v63_v24 = vrot.slane %v62_v23, 1 }
  0xe2   :  { %v64_v25 = vadd.f32 %v63_v24, %v62_v23 }
  0xe4   :  { %83 = vpush %v64_v25 }
 0x115   :  { %s84_s1 = spop %83 }
 0x116   :  { %67 = sst [smem:[#allocation7]] %s84_s1 }
 0x117   :  { %145 = shalt.err (!%p142_p4)
}
 0x118   :  { %s154_s11 = smov [#allocation7]  }
 0x119   :  { %75 = dma.smem_to_hbm %s154_s11, 16, %s208_s2, [#allocation4]  }
 0x11a   :  { %150 = dma.done.wait [#allocation4], 16  }
 0x11b   :  { %151 = vsyncadd [#allocation4], 4294967280 }
 0x11c   :  { %79 = sfence }
 0x11d   :  { %80 = vsyncpa [#allocation3], 1 }
 0x11e   :  { %81 = vsyncpa [#allocation6], 1 }
 0x11f   :  { %82 = vsyncpa [#allocation4], 1 }

</bundles_post_ra>
